<compile_context>
chip_gen: v7x
topology: tpu7x:2x2x1
jax: 0.10.0
libtpu: 0.0.40
codegen_flags: <defaults>
</compile_context>

<pallas_src>
import jax
import jax.numpy as jnp
from jax.experimental import pallas as pl
from jax.experimental.pallas import tpu as pltpu  # noqa: F401  (TPU backend)


def _awl_kernel(x_ref, p_ref, out_ref):
    """out[0,0] = sum_i 0.5 / p_i^2 * x_i + log(1 + p_i^2).

    x_ref, p_ref: (1, num) f32 VMEM blocks (full arrays — no padding, no mask).
    out_ref:      (1, 1)  f32 VMEM block.
    """
    x = x_ref[...]                                # (1, num) per-task losses
    p = p_ref[...]                                # (1, num) learnable weights
    p2 = p * p
    term = 0.5 * x * pl.reciprocal(p2, approx=False) + jnp.log1p(p2)
    out_ref[...] = jnp.sum(term).reshape(1, 1)


def _awl_pallas(losses, params):
    """Forward pass via a single no-grid pallas_call."""
    num = losses.shape[0]
    assert params.shape == (num,)
    # reshape to (1, num) is a free metadata op; inputs are already f32 here.
    x2d = jnp.asarray(losses, jnp.float32).reshape(1, num)
    p2d = jnp.asarray(params, jnp.float32).reshape(1, num)

    out = pl.pallas_call(
        _awl_kernel,
        out_shape=jax.ShapeDtypeStruct((1, 1), jnp.float32),
        in_specs=[
            pl.BlockSpec((1, num), lambda: (0, 0)),   # full-array block
            pl.BlockSpec((1, num), lambda: (0, 0)),   # full-array block
        ],
        out_specs=pl.BlockSpec((1, 1), lambda: (0, 0)),
    )(x2d, p2d)
    return out[0, 0]


@jax.custom_vjp
def automatic_weighted_loss(losses, params):
    """losses: (num,) f32 per-task losses; params: (num,) f32 learnable weights."""
    return _awl_pallas(losses, params)


def _awl_fwd(losses, params):
    return _awl_pallas(losses, params), (losses, params)


def _awl_bwd(res, g):
    losses, params = res
    losses = losses.astype(jnp.float32)
    params = params.astype(jnp.float32)
    p2 = params * params
    d_losses = g * (0.5 / p2)
    d_params = g * (-losses / (p2 * params) + 2.0 * params / (1.0 + p2))
    return d_losses, d_params


automatic_weighted_loss.defvjp(_awl_fwd, _awl_bwd)


if __name__ == "__main__":
    num = 2  # AutomaticWeightedLoss(num=2)

    # Deterministic parameter init, matching torch.ones(num).
    params = jnp.ones((num,), jnp.float32)

    # Deterministic example per-task scalar losses.
    key = jax.random.PRNGKey(0)
    losses = jax.random.uniform(key, (num,), jnp.float32, minval=0.5, maxval=2.0)

    result = jax.block_until_ready(automatic_weighted_loss(losses, params))

    # Pure-JAX reference: forward semantics sanity check.
    ref = jnp.sum(0.5 / params**2 * losses + jnp.log1p(params**2))
    assert jnp.allclose(result, ref, rtol=1e-5, atol=1e-5), (result, ref)

    # Gradient sanity check (params is learnable in the original module).
    g_ref = jax.grad(lambda p: jnp.sum(0.5 / p**2 * losses + jnp.log1p(p**2)))(params)
    g_ker = jax.grad(lambda p: automatic_weighted_loss(losses, p))(params)
    g_ker = jax.block_until_ready(g_ker)
    assert jnp.allclose(g_ker, g_ref, rtol=1e-5, atol=1e-5), (g_ker, g_ref)

    print("KERNEL_OK")
</pallas_src>

<mosaic_0001>
module attributes {stable_mosaic.version = 11 : i64} {
  func.func @_awl_kernel(%arg0: memref<1x2xf32, #tpu.memory_space<vmem>>, %arg1: memref<1x2xf32, #tpu.memory_space<vmem>>, %arg2: memref<1x1xf32, #tpu.memory_space<vmem>>) attributes {dimension_semantics = [], scalar_prefetch = 0 : i64, scratch_operands = 0 : i64, tpu.core_type = #tpu.core_type<tc>} {
    %c0 = arith.constant 0 : index
    %c0_0 = arith.constant 0 : index
    %0 = vector.load %arg0[%c0, %c0_0] : memref<1x2xf32, #tpu.memory_space<vmem>>, vector<1x2xf32>
    %c0_1 = arith.constant 0 : index
    %c0_2 = arith.constant 0 : index
    %1 = vector.load %arg1[%c0_1, %c0_2] : memref<1x2xf32, #tpu.memory_space<vmem>>, vector<1x2xf32>
    %2 = arith.mulf %1, %1 : vector<1x2xf32>
    %cst = arith.constant 5.000000e-01 : f32
    %3 = vector.broadcast %cst : f32 to vector<1x2xf32>
    %4 = arith.mulf %3, %0 : vector<1x2xf32>
    %5 = tpu.reciprocal %2 : vector<1x2xf32> -> vector<1x2xf32>
    %6 = arith.mulf %4, %5 : vector<1x2xf32>
    %7 = math.log1p %2 : vector<1x2xf32>
    %8 = arith.addf %6, %7 : vector<1x2xf32>
    %9 = vector.shape_cast %8 : vector<1x2xf32> to vector<1x1x2xf32>
    %cst_3 = arith.constant dense<0.000000e+00> : vector<1xf32>
    %10 = vector.multi_reduction <add>, %9, %cst_3 [1, 2] : vector<1x1x2xf32> to vector<1xf32>
    %11 = vector.shape_cast %10 : vector<1xf32> to vector<1x1x1xf32>
    %12 = vector.extract %11[0, 0, 0] : f32 from vector<1x1x1xf32>
    %13 = vector.broadcast %12 : f32 to vector<1x1xf32>
    %c0_4 = arith.constant 0 : index
    %c0_5 = arith.constant 0 : index
    %14 = vector.load %arg2[%c0_4, %c0_5] : memref<1x1xf32, #tpu.memory_space<vmem>>, vector<1x1xf32>
    tpu.vector_store %arg2[%c0_4, %c0_5], %13 {strides = array<i32>} : memref<1x1xf32, #tpu.memory_space<vmem>>, vector<1x1xf32>,
    return
  }
}

</mosaic_0001>

<bundles_post_ra>
// kernel: tpu_custom_call.1
= control target key start
LH: loop header
LB: loop body
LE: loop exit
PB: predicated region body
PF: predicated region fallthrough
CT: control target
= control target key end

     0   :  { %7 = vsyncpa [#allocation3], 0  ;;  %s169_s0 = inlined_call_operand.hbm [shape: f32[1,2], index: 0, kind: input, shape index: {}]   ;;  %s170_s1 = inlined_call_operand.vmem [shape: f32[1,2], index: 1, kind: input, shape index: {}]   ;;  %s171_s2 = inlined_call_operand.hbm [shape: f32[1,1], index: 2, kind: output, shape index: {}]  }
   0x1   :  { %8 = vsyncpa [#allocation4], 0  ;;  %s125_s9 = smov [#allocation2]   ;;  %s77_s13 = scalar_lea.hbm %s169_s0, 16 }
   0x2   :  { %s15_s10 = sshll.u32 %s125_s9, 4  ;;  %p78_p0 = scmp.ne.s32.totalorder %s169_s0, %s77_s13  ;;  %s16_s10 = int_to_ptr.vmem [resolvable:$true] %s15_s10 }
   0x3   :  { %p81_p1 = scmp.lt.u32.totalorder %s77_s13, %s169_s0 }
   0x5   :  { %p83_p2 = pnand %p81_p1, %p78_p0 }
   0x7   :  { %86 = shalt.err (!%p83_p2)
}
   0x8   :  { %s87_s18 = scalar_lea.vmem %s16_s10, 16  ;;  %s91_s19 = scalar_lea.vmem %s16_s10, 32 }
   0x9   :  { %p88_p3 = scmp.ne.s32.totalorder %s16_s10, %s87_s18  ;;  %p92_p4 = scmp.lt.s32.totalorder %s16_s10, %s16_s10 }
   0xa   :  { %p93_p5 = scmp.lt.s32.totalorder %s91_s19, %s87_s18 }
   0xc   :  { %p94_p6 = por %p93_p5, %p92_p4 }
   0xe   :  { %p95_p7 = pnand %p94_p6, %p88_p3 }
  0x10   :  { %98 = shalt.err (!%p95_p7)
}
  0x11   :  { %18 = dma.hbm_to_vmem [thread:$0]  %s169_s0, 16, %s16_s10, [#allocation3]  }
  0x12   :  { %121 = dma.done.wait [#allocation3], 16  }
  0x13   :  { %122 = vsyncadd [#allocation3], 4294967280  ;;  %v25_v0 = vld [vmem:[%s170_s1] sm:$0x1]  ;;  %vm40_vm1 = vcmask 8192   ;;  %s126_s0 = smov [#allocation5]  }
  0x14   :  { %v26_v1 = vmul.f32 %v25_v0, %v25_v0  ;;  %v24_v4 = vld [vmem:[#allocation2] sm:$0x1]  ;;  %s60_s1 = sshll.u32 %s126_s0, 4  ;;  %vm52_vm2 = vcmask 0   ;;  %s61_s1 = int_to_ptr.vmem [resolvable:$true] %s60_s1 }
  0x15   :  { %v27_v6 = vmul.f32 0.5, %v24_v4  ;;  %s99_s25 = scalar_lea.vmem %s61_s1, 16  ;;  %s103_s26 = scalar_lea.vmem %s61_s1, 32 }
  0x16   :  { %73 = vrcp.f32 %v26_v1  ;;  %v30_v2 = vadd.f32 1.0, %v26_v1  ;;  %v33_v3 = vmul.f32 -0.5, %v26_v1  ;;  %v36_v7 = vand.u32 2147483647, %v26_v1  ;;  %p100_p8 = scmp.ne.s32.totalorder %s61_s1, %s99_s25  ;;  %p104_p9 = scmp.lt.s32.totalorder %s61_s1, %s61_s1 }
  0x17   :  { %p105_p10 = scmp.lt.s32.totalorder %s103_s26, %s99_s25 }
  0x18   :  { %75 = vlog2.f32 %v30_v2  ;;  %v34_v5 = vadd.f32 1.0, %v33_v3  ;;  %vm37_vm0 = vcmp.lt.f32.partialorder %v36_v7, 0.0004427343 }
  0x19   :  { %p106_p11 = por %p105_p10, %p104_p9 }
  0x1a   :  { %v35_v9 = vmul.f32 %v34_v5, %v26_v1 }
  0x1b   :  { %p107_p12 = pnand %p106_p11, %p100_p8 }
  0x20   :  { %v74_v8 = vpop.eup %73 }
  0x21   :  { %v29_v11 = vmul.f32 %v74_v8, %v27_v6 }
  0x22   :  { %v76_v10 = vpop.eup %75 }
  0x23   :  { %v32_v12 = vmul.f32 0.6931472, %v76_v10 }
  0x25   :  { %v38_v13 = vsel %vm37_vm0, %v35_v9, %v32_v12 }
  0x26   :  { %v39_v14 = vadd.f32 %v38_v13, %v29_v11 }
  0x28   :  { %v41_v15 = vsel %vm40_vm1, %v39_v14, 0.0 }
  0x29   :  { %42 = vadd.xlane.f32.xlu0 %v41_v15 }
  0xb6   :  { %v43_v16 = vpop.xlane.xlu0 %42 }
  0xb7   :  { %v44_v17 = vrot.slane %v43_v16, 4 }
  0xb9   :  { %v45_v18 = vadd.f32 %v44_v17, %v43_v16 }
  0xbb   :  { %v46_v19 = vrot.slane %v45_v18, 2 }
  0xbd   :  { %v47_v20 = vadd.f32 %v46_v19, %v45_v18 }
  0xbf   :  { %v48_v21 = vrot.slane %v47_v20, 1 }
  0xc1   :  { %v49_v22 = vadd.f32 %v48_v21, %v47_v20 }
  0xc3   :  { %69 = vpush %v49_v22 }
  0xf4   :  { %s70_s24 = spop %69 }
  0xf5   :  { %v51_v23 = vstv %s70_s24 }
  0xf6   :  { %53 = vst.msk [vmem:[#allocation5] sm:$0x1] %vm52_vm2, %v51_v23 }
  0xf7   :  { %110 = shalt.err (!%p107_p12)
}
  0xf8   :  { %s111_s29 = scalar_lea.hbm %s171_s2, 16 }
  0xf9   :  { %p112_p13 = scmp.ne.s32.totalorder %s171_s2, %s111_s29  ;;  %p115_p0 = scmp.lt.u32.totalorder %s111_s29, %s171_s2 }
  0xfb   :  { %p117_p1 = pnand %p115_p0, %p112_p13 }
  0xfd   :  { %120 = shalt.err (!%p117_p1)
}
  0xfe   :  { %63 = dma.vmem_to_hbm [thread:$0]  %s61_s1, 16, %s171_s2, [#allocation4]  }
  0xff   :  { %123 = dma.done.wait [#allocation4], 16  }
 0x100   :  { %124 = vsyncadd [#allocation4], 4294967280 }
 0x101   :  { %67 = vsyncpa [#allocation3], 1 }
 0x102   :  { %68 = vsyncpa [#allocation4], 1 }

</bundles_post_ra>
